<compile_context>
chip_gen: v7x
topology: tpu7x:2x2x1
jax: 0.10.0
libtpu: 0.0.40
codegen_flags: <defaults>
</compile_context>

<pallas_src>
import jax
import jax.numpy as jnp
from jax.experimental import pallas as pl
from jax.experimental.pallas import tpu as pltpu


def _make_distill_loss_kernel(*, num_splits, n_per_core, tile_b, cols,
                              needs_mask, row_mask_only, use_bf16_tanh):
    """Build the kernel with all shape / branch decisions baked in statically."""

    def kernel(params_ref, nvalid_ref, s_ref, t_ref, y_ref,
               out_ref, acc_d_ref, acc_b_ref):
        # params_ref (SMEM f32[4]): [0.5/T, alpha*0.25/count, (1-alpha)/count, 0]
        # nvalid_ref (SMEM i32[2]): [valid element count, valid row count]
        c = pl.program_id(0)      # parallel (megacore) axis
        i = pl.program_id(1)      # reduction axis (this core's row tiles)

        @pl.when(i == 0)
        def _init():
            acc_d_ref[...] = jnp.zeros_like(acc_d_ref)
            acc_b_ref[...] = jnp.zeros_like(acc_b_ref)

        half_inv_temp = params_ref[0]
        w_distill = params_ref[1]
        w_bce = params_ref[2]

        s_raw = s_ref[...]
        t_raw = t_ref[...]
        s = s_raw.astype(jnp.float32)
        y = y_ref[...].astype(jnp.float32)

        # sigmoid(a/T) - sigmoid(b/T) = 0.5*(tanh(a/2T) - tanh(b/2T)); the 0.25
        # factor is folded into w_distill.  bf16 tanh for bf16 callers.
        if use_bf16_tanh:
            scale = half_inv_temp.astype(jnp.bfloat16)
            th_s = jnp.tanh(s_raw * scale).astype(jnp.float32)
            th_t = jnp.tanh(t_raw * scale).astype(jnp.float32)
        else:
            th_s = jnp.tanh(s * half_inv_temp)
            th_t = jnp.tanh(t_raw.astype(jnp.float32) * half_inv_temp)
        d = th_s - th_t
        d2 = d * d

        # Numerically stable BCEWithLogits: max(x,0) - x*y + log1p(exp(-|x|))
        bce = jnp.maximum(s, 0.0) - s * y + jnp.log1p(jnp.exp(-jnp.abs(s)))

        def fold(x):
            # Cheap VPU fold into the (8, cols) accumulator; the expensive
            # cross-lane reduction happens exactly once, in finalize.
            return x.reshape(tile_b // 8, 8, cols).sum(axis=0)

        def accumulate(d2_v, bce_v):
            acc_d_ref[...] += fold(d2_v)
            acc_b_ref[...] += fold(bce_v)

        if needs_mask:
            # Only the globally-last tile can contain invalid (padding) data;
            # every other tile takes the mask-free fast path.
            is_edge = jnp.logical_and(c == num_splits - 1, i == n_per_core - 1)

            @pl.when(is_edge)
            def _edge():
                base_row = (c * n_per_core + i) * tile_b
                row = (jax.lax.broadcasted_iota(jnp.int32, (tile_b, 1), 0)
                       + base_row)
                if row_mask_only:
                    valid = row < nvalid_ref[1]                      # (tile_b, 1)
                else:
                    lane = jax.lax.broadcasted_iota(jnp.int32, (tile_b, cols), 1)
                    valid = (row * cols + lane) < nvalid_ref[0]      # (tile_b, cols)
                # Keep these as selects: NaN/Inf-safe for garbage padding rows.
                accumulate(jnp.where(valid, d2, 0.0),
                           jnp.where(valid, bce, 0.0))

            @pl.when(jnp.logical_not(is_edge))
            def _bulk():
                accumulate(d2, bce)
        else:
            accumulate(d2, bce)

        @pl.when(i == n_per_core - 1)
        def _finalize():
            partial = (w_distill * jnp.sum(acc_d_ref[...])
                       + w_bce * jnp.sum(acc_b_ref[...]))
            out_ref[...] = jnp.full(out_ref.shape, partial, jnp.float32)

    return kernel


def multilabel_distillation_loss(student_logits, teacher_logits, true_labels,
                                 epoch, num_epochs,
                                 temperature=5.0, alpha=0.5,
                                 final_temperature=1.0):
    """Pallas wrapper matching the PyTorch module's forward semantics."""
    batch, num_labels = student_logits.shape
    valid_count = batch * num_labels

    # Temperature annealing (scalar glue, outside the kernel).
    temp = temperature - (temperature - final_temperature) * (epoch / num_epochs)
    count = float(valid_count)
    params = jnp.array([0.5 / temp,
                        alpha * 0.25 / count,
                        (1.0 - alpha) / count,
                        0.0], dtype=jnp.float32)

    if true_labels.dtype == jnp.bool_:
        true_labels = true_labels.astype(jnp.float32)

    # Lane-dense packing when num_labels is not a 128 multiple: flatten the
    # three inputs to (rows, 128).  (Ideally done at the producer; here it
    # costs one relayout pass but recovers lane/VMEM/DMA utilization.)
    if num_labels % 128 == 0:
        cols, rows = num_labels, batch
        s_in, t_in, y_in = student_logits, teacher_logits, true_labels
    else:
        cols = 128
        rows = pl.cdiv(valid_count, 128)
        pad = rows * 128 - valid_count

        def to_lane_dense(x):
            flat = x.reshape(-1)
            if pad:
                flat = jnp.pad(flat, (0, pad))
            return flat.reshape(rows, cols)

        s_in = to_lane_dense(student_logits)
        t_in = to_lane_dense(teacher_logits)
        y_in = to_lane_dense(true_labels)

    itemsize = jnp.dtype(s_in.dtype).itemsize

    # Tile sizing: 3 inputs x 2 pipeline buffers at native itemsize plus ~6
    # full-tile f32 temporaries, kept under a per-core budget that is safe on
    # v7x (64 MiB physical / 32 MiB scoped per TensorCore).
    vmem_budget = 10 * 1024 * 1024
    per_row_bytes = cols * (3 * 2 * itemsize + 6 * 4)
    cap = max(8, (vmem_budget // per_row_bytes) // 8 * 8)
    padded_rows = -(-rows // 8) * 8
    tile_b = int(min(cap, 2048, padded_rows))

    total_tiles = pl.cdiv(rows, tile_b)
    # 2-TensorCore (v7x megacore) split over a leading "parallel" grid axis;
    # each core emits its own partial-loss block, summed in the wrapper.
    # TODO(synk): odd tile counts fall back to a single-core grid.
    num_splits = 2 if (total_tiles >= 2 and total_tiles % 2 == 0) else 1
    n_per_core = total_tiles // num_splits

    needs_mask = (num_splits * n_per_core * tile_b * cols != valid_count)
    row_mask_only = (valid_count % cols == 0)
    use_bf16_tanh = (s_in.dtype == jnp.bfloat16 and t_in.dtype == jnp.bfloat16)

    nvalid = jnp.array([valid_count, valid_count // cols], dtype=jnp.int32)

    kernel = _make_distill_loss_kernel(
        num_splits=num_splits, n_per_core=n_per_core, tile_b=tile_b, cols=cols,
        needs_mask=needs_mask, row_mask_only=row_mask_only,
        use_bf16_tanh=use_bf16_tanh)

    cost = pl.CostEstimate(
        flops=20 * valid_count,
        transcendentals=4 * valid_count,
        bytes_accessed=3 * valid_count * itemsize + num_splits * 8 * 128 * 4)

    partials = pl.pallas_call(
        kernel,
        out_shape=jax.ShapeDtypeStruct((num_splits, 8, 128), jnp.float32),
        grid=(num_splits, n_per_core),
        in_specs=[
            pl.BlockSpec(memory_space=pltpu.SMEM),
            pl.BlockSpec(memory_space=pltpu.SMEM),
            pl.BlockSpec((tile_b, cols), lambda c, i: (c * n_per_core + i, 0)),
            pl.BlockSpec((tile_b, cols), lambda c, i: (c * n_per_core + i, 0)),
            pl.BlockSpec((tile_b, cols), lambda c, i: (c * n_per_core + i, 0)),
        ],
        out_specs=pl.BlockSpec((1, 8, 128), lambda c, i: (c, 0, 0)),
        scratch_shapes=[
            pltpu.VMEM((8, cols), jnp.float32),
            pltpu.VMEM((8, cols), jnp.float32),
        ],
        compiler_params=pltpu.CompilerParams(
            dimension_semantics=("parallel", "arbitrary"),
            vmem_limit_bytes=32 * 1024 * 1024),
        cost_estimate=cost,
    )(params, nvalid, s_in, t_in, y_in)

    return jnp.sum(partials[:, 0, 0])


def _reference(student, teacher, labels, epoch, num_epochs,
               temperature=5.0, alpha=0.5, final_temperature=1.0):
    temp = temperature - (temperature - final_temperature) * (epoch / num_epochs)
    s = student.astype(jnp.float32)
    t = teacher.astype(jnp.float32)
    y = labels.astype(jnp.float32)
    sp = jax.nn.sigmoid(s / temp)
    tp = jax.nn.sigmoid(t / temp)
    distill = jnp.mean((sp - tp) ** 2)
    bce = jnp.mean(jnp.maximum(s, 0.0) - s * y
                   + jnp.log1p(jnp.exp(-jnp.abs(s))))
    return alpha * distill + (1.0 - alpha) * bce


if __name__ == "__main__":
    key = jax.random.PRNGKey(0)
    k1, k2, k3 = jax.random.split(key, 3)

    batch, num_labels = 8, 128
    student_logits = jax.random.normal(k1, (batch, num_labels), jnp.float32) * 2.0
    teacher_logits = jax.random.normal(k2, (batch, num_labels), jnp.float32) * 2.0
    true_labels = (jax.random.uniform(k3, (batch, num_labels)) > 0.5).astype(jnp.float32)

    epoch, num_epochs = 3, 10

    loss = multilabel_distillation_loss(student_logits, teacher_logits,
                                        true_labels, epoch, num_epochs)
    loss = jax.block_until_ready(loss)

    ref = _reference(student_logits, teacher_logits, true_labels, epoch, num_epochs)
    assert jnp.allclose(loss, ref, rtol=1e-4, atol=1e-5), (loss, ref)

    print("KERNEL_OK")
</pallas_src>

<mosaic_0001>
module attributes {stable_mosaic.version = 11 : i64} {
  func.func @kernel(%arg0: i32, %arg1: i32, %arg2: memref<4xf32, #tpu.memory_space<smem>>, %arg3: memref<2xi32, #tpu.memory_space<smem>>, %arg4: memref<8x128xf32, #tpu.memory_space<vmem>>, %arg5: memref<8x128xf32, #tpu.memory_space<vmem>>, %arg6: memref<8x128xf32, #tpu.memory_space<vmem>>, %arg7: memref<1x8x128xf32, #tpu.memory_space<vmem>>, %arg8: memref<8x128xf32, #tpu.memory_space<vmem>>, %arg9: memref<8x128xf32, #tpu.memory_space<vmem>>) attributes {dimension_semantics = [#tpu.dimension_semantics<parallel>, #tpu.dimension_semantics<arbitrary>], iteration_bounds = array<i64: 1, 1>, scalar_prefetch = 0 : i64, scratch_operands = 2 : i64, tpu.core_type = #tpu.core_type<tc>, window_params = [{transform_indices = @transform_0, window_bounds = array<i64: 4>}, {transform_indices = @transform_1, window_bounds = array<i64: 2>}, {transform_indices = @transform_2, window_bounds = array<i64: 8, 128>}, {transform_indices = @transform_3, window_bounds = array<i64: 8, 128>}, {transform_indices = @transform_4, window_bounds = array<i64: 8, 128>}, {transform_indices = @transform_5, window_bounds = array<i64: 1, 8, 128>}]} {
    %c0_i32 = arith.constant 0 : i32
    %0 = arith.cmpi eq, %arg1, %c0_i32 : i32
    %1 = arith.extui %0 : i1 to i32
    %c0_i32_0 = arith.constant 0 : i32
    %2 = arith.cmpi ne, %1, %c0_i32_0 : i32
    scf.if %2 {
      %cst_20 = arith.constant 0.000000e+00 : f32
      %40 = vector.broadcast %cst_20 : f32 to vector<8x128xf32>
      %c0_21 = arith.constant 0 : index
      %c0_22 = arith.constant 0 : index
      %41 = vector.load %arg8[%c0_21, %c0_22] : memref<8x128xf32, #tpu.memory_space<vmem>>, vector<8x128xf32>
      tpu.vector_store %arg8[%c0_21, %c0_22], %40 {strides = array<i32>} : memref<8x128xf32, #tpu.memory_space<vmem>>, vector<8x128xf32>,
      %cst_23 = arith.constant 0.000000e+00 : f32
      %42 = vector.broadcast %cst_23 : f32 to vector<8x128xf32>
      %c0_24 = arith.constant 0 : index
      %c0_25 = arith.constant 0 : index
      %43 = vector.load %arg9[%c0_24, %c0_25] : memref<8x128xf32, #tpu.memory_space<vmem>>, vector<8x128xf32>
      tpu.vector_store %arg9[%c0_24, %c0_25], %42 {strides = array<i32>} : memref<8x128xf32, #tpu.memory_space<vmem>>, vector<8x128xf32>,
    } else {
    }
    %c0 = arith.constant 0 : index
    %3 = memref.load %arg2[%c0] : memref<4xf32, #tpu.memory_space<smem>>
    %c1 = arith.constant 1 : index
    %4 = memref.load %arg2[%c1] : memref<4xf32, #tpu.memory_space<smem>>
    %c2 = arith.constant 2 : index
    %5 = memref.load %arg2[%c2] : memref<4xf32, #tpu.memory_space<smem>>
    %c0_1 = arith.constant 0 : index
    %c0_2 = arith.constant 0 : index
    %6 = vector.load %arg4[%c0_1, %c0_2] : memref<8x128xf32, #tpu.memory_space<vmem>>, vector<8x128xf32>
    %c0_3 = arith.constant 0 : index
    %c0_4 = arith.constant 0 : index
    %7 = vector.load %arg5[%c0_3, %c0_4] : memref<8x128xf32, #tpu.memory_space<vmem>>, vector<8x128xf32>
    %c0_5 = arith.constant 0 : index
    %c0_6 = arith.constant 0 : index
    %8 = vector.load %arg6[%c0_5, %c0_6] : memref<8x128xf32, #tpu.memory_space<vmem>>, vector<8x128xf32>
    %9 = vector.broadcast %3 : f32 to vector<8x128xf32>
    %10 = arith.mulf %6, %9 : vector<8x128xf32>
    %11 = math.tanh %10 : vector<8x128xf32>
    %12 = vector.broadcast %3 : f32 to vector<8x128xf32>
    %13 = arith.mulf %7, %12 : vector<8x128xf32>
    %14 = math.tanh %13 : vector<8x128xf32>
    %15 = arith.subf %11, %14 : vector<8x128xf32>
    %16 = arith.mulf %15, %15 : vector<8x128xf32>
    %cst = arith.constant 0.000000e+00 : f32
    %17 = vector.broadcast %cst : f32 to vector<8x128xf32>
    %18 = arith.maximumf %6, %17 : vector<8x128xf32>
    %19 = arith.mulf %6, %8 : vector<8x128xf32>
    %20 = arith.subf %18, %19 : vector<8x128xf32>
    %21 = math.absf %6 : vector<8x128xf32>
    %cst_7 = arith.constant 0.000000e+00 : f32
    %22 = vector.broadcast %cst_7 : f32 to vector<8x128xf32>
    %23 = arith.subf %22, %21 : vector<8x128xf32>
    %24 = math.exp %23 : vector<8x128xf32>
    %25 = math.log1p %24 : vector<8x128xf32>
    %26 = arith.addf %20, %25 : vector<8x128xf32>
    %c0_8 = arith.constant 0 : index
    %c0_9 = arith.constant 0 : index
    %27 = vector.load %arg8[%c0_8, %c0_9] : memref<8x128xf32, #tpu.memory_space<vmem>>, vector<8x128xf32>
    %28 = vector.shape_cast %16 : vector<8x128xf32> to vector<1x8x128xf32>
    %cst_10 = arith.constant dense<0.000000e+00> : vector<8x128xf32>
    %29 = vector.multi_reduction <add>, %28, %cst_10 [0] : vector<1x8x128xf32> to vector<8x128xf32>
    %30 = arith.addf %27, %29 : vector<8x128xf32>
    %c0_11 = arith.constant 0 : index
    %c0_12 = arith.constant 0 : index
    %31 = vector.load %arg8[%c0_11, %c0_12] : memref<8x128xf32, #tpu.memory_space<vmem>>, vector<8x128xf32>
    tpu.vector_store %arg8[%c0_11, %c0_12], %30 {strides = array<i32>} : memref<8x128xf32, #tpu.memory_space<vmem>>, vector<8x128xf32>,
    %c0_13 = arith.constant 0 : index
    %c0_14 = arith.constant 0 : index
    %32 = vector.load %arg9[%c0_13, %c0_14] : memref<8x128xf32, #tpu.memory_space<vmem>>, vector<8x128xf32>
    %33 = vector.shape_cast %26 : vector<8x128xf32> to vector<1x8x128xf32>
    %cst_15 = arith.constant dense<0.000000e+00> : vector<8x128xf32>
    %34 = vector.multi_reduction <add>, %33, %cst_15 [0] : vector<1x8x128xf32> to vector<8x128xf32>
    %35 = arith.addf %32, %34 : vector<8x128xf32>
    %c0_16 = arith.constant 0 : index
    %c0_17 = arith.constant 0 : index
    %36 = vector.load %arg9[%c0_16, %c0_17] : memref<8x128xf32, #tpu.memory_space<vmem>>, vector<8x128xf32>
    tpu.vector_store %arg9[%c0_16, %c0_17], %35 {strides = array<i32>} : memref<8x128xf32, #tpu.memory_space<vmem>>, vector<8x128xf32>,
    %c0_i32_18 = arith.constant 0 : i32
    %37 = arith.cmpi eq, %arg1, %c0_i32_18 : i32
    %38 = arith.extui %37 : i1 to i32
    %c0_i32_19 = arith.constant 0 : i32
    %39 = arith.cmpi ne, %38, %c0_i32_19 : i32
    scf.if %39 {
      %c0_20 = arith.constant 0 : index
      %c0_21 = arith.constant 0 : index
      %40 = vector.load %arg8[%c0_20, %c0_21] : memref<8x128xf32, #tpu.memory_space<vmem>>, vector<8x128xf32>
      %41 = vector.shape_cast %40 : vector<8x128xf32> to vector<1x8x128xf32>
      %cst_22 = arith.constant dense<0.000000e+00> : vector<1xf32>
      %42 = vector.multi_reduction <add>, %41, %cst_22 [1, 2] : vector<1x8x128xf32> to vector<1xf32>
      %43 = vector.shape_cast %42 : vector<1xf32> to vector<1x1x1xf32>
      %44 = vector.extract %43[0, 0, 0] : f32 from vector<1x1x1xf32>
      %45 = arith.mulf %4, %44 : f32
      %c0_23 = arith.constant 0 : index
      %c0_24 = arith.constant 0 : index
      %46 = vector.load %arg9[%c0_23, %c0_24] : memref<8x128xf32, #tpu.memory_space<vmem>>, vector<8x128xf32>
      %47 = vector.shape_cast %46 : vector<8x128xf32> to vector<1x8x128xf32>
      %cst_25 = arith.constant dense<0.000000e+00> : vector<1xf32>
      %48 = vector.multi_reduction <add>, %47, %cst_25 [1, 2] : vector<1x8x128xf32> to vector<1xf32>
      %49 = vector.shape_cast %48 : vector<1xf32> to vector<1x1x1xf32>
      %50 = vector.extract %49[0, 0, 0] : f32 from vector<1x1x1xf32>
      %51 = arith.mulf %5, %50 : f32
      %52 = arith.addf %45, %51 : f32
      %53 = vector.broadcast %52 : f32 to vector<1x8x128xf32>
      %c0_26 = arith.constant 0 : index
      %c0_27 = arith.constant 0 : index
      %c0_28 = arith.constant 0 : index
      %54 = vector.load %arg7[%c0_26, %c0_27, %c0_28] : memref<1x8x128xf32, #tpu.memory_space<vmem>>, vector<1x8x128xf32>
      tpu.vector_store %arg7[%c0_26, %c0_27, %c0_28], %53 {strides = array<i32>} : memref<1x8x128xf32, #tpu.memory_space<vmem>>, vector<1x8x128xf32>,
    } else {
    }
    return
  }
  func.func @transform_0(%arg0: i32, %arg1: i32) -> i32 {
    %c0_i32 = arith.constant 0 : i32
    %c0_i32_0 = arith.constant 0 : i32
    return %c0_i32 : i32
  }
  func.func @transform_1(%arg0: i32, %arg1: i32) -> i32 {
    %c0_i32 = arith.constant 0 : i32
    %c0_i32_0 = arith.constant 0 : i32
    return %c0_i32 : i32
  }
  func.func @transform_2(%arg0: i32, %arg1: i32) -> (i32, i32) {
    %c1_i32 = arith.constant 1 : i32
    %0 = arith.muli %arg0, %c1_i32 : i32
    %1 = arith.addi %0, %arg1 : i32
    %c0_i32 = arith.constant 0 : i32
    %c0_i32_0 = arith.constant 0 : i32
    return %1, %c0_i32 : i32, i32
  }
  func.func @transform_3(%arg0: i32, %arg1: i32) -> (i32, i32) {
    %c1_i32 = arith.constant 1 : i32
    %0 = arith.muli %arg0, %c1_i32 : i32
    %1 = arith.addi %0, %arg1 : i32
    %c0_i32 = arith.constant 0 : i32
    %c0_i32_0 = arith.constant 0 : i32
    return %1, %c0_i32 : i32, i32
  }
  func.func @transform_4(%arg0: i32, %arg1: i32) -> (i32, i32) {
    %c1_i32 = arith.constant 1 : i32
    %0 = arith.muli %arg0, %c1_i32 : i32
    %1 = arith.addi %0, %arg1 : i32
    %c0_i32 = arith.constant 0 : i32
    %c0_i32_0 = arith.constant 0 : i32
    return %1, %c0_i32 : i32, i32
  }
  func.func @transform_5(%arg0: i32, %arg1: i32) -> (i32, i32, i32) {
    %c0_i32 = arith.constant 0 : i32
    %c0_i32_0 = arith.constant 0 : i32
    %c0_i32_1 = arith.constant 0 : i32
    return %arg0, %c0_i32, %c0_i32_0 : i32, i32, i32
  }
}

</mosaic_0001>

<bundles_post_ra>
// kernel: tpu_custom_call.1
= control target key start
LH: loop header
LB: loop body
LE: loop exit
PB: predicated region body
PF: predicated region fallthrough
CT: control target
= control target key end

     0   :  { %10 = vsyncpa [#allocation7], 0  ;;  %s395_s0 = inlined_call_operand.hbm [shape: f32[4], index: 0, kind: input, shape index: {}]   ;;  %s396_s1 = inlined_call_operand.vmem [shape: s32[2], index: 1, kind: input, shape index: {}]   ;;  %s397_s2 = inlined_call_operand.hbm [shape: f32[8,128], index: 2, kind: input, shape index: {}]   ;;  %s398_s3 = inlined_call_operand.vmem [shape: f32[8,128], index: 3, kind: input, shape index: {}]   ;;  %s399_s4 = inlined_call_operand.hbm [shape: f32[8,128], index: 4, kind: input, shape index: {}]   ;;  %s400_s5 = inlined_call_operand.hbm [shape: f32[1,8,128], index: 5, kind: output, shape index: {}]  }
   0x1   :  { %11 = vsyncpa [#allocation8], 0 }
   0x2   :  { %12 = vsyncpa [#allocation5], 0 }
   0x3   :  { %13 = vsyncpa [#allocation12], 0 }
   0x4   :  { %14 = vsyncpa [#allocation6], 0  ;;  %s29_s20 = sshll.u32 %s396_s1, 4  ;;  %s208_s23 = scalar_lea.hbm %s395_s0, 16  ;;  %s30_s20 = int_to_ptr.vmem [resolvable:$true] %s29_s20 }
   0x5   :  { %p209_p0 = scmp.ne.s32.totalorder %s395_s0, %s208_s23  ;;  %p212_p1 = scmp.lt.u32.totalorder %s208_s23, %s395_s0 }
   0x7   :  { %p214_p2 = pnand %p212_p1, %p209_p0 }
   0x9   :  { %217 = shalt.err (!%p214_p2)
}
   0xa   :  { %s306_s28 = smov [#allocation4]   ;;  %s218_s1 = scalar_lea.vmem %s30_s20, 16 }
   0xb   :  { %22 = dma.hbm_to_smem %s395_s0, 16, %s306_s28, [#allocation7]  }
   0xc   :  { %p219_p3 = scmp.ne.s32.totalorder %s30_s20, %s218_s1  ;;  %p223_p4 = scmp.lt.s32.totalorder %s30_s20, %s30_s20 }
   0xd   :  { %p224_p5 = scmp.lt.s32.totalorder %s218_s1, %s218_s1 }
   0xf   :  { %p225_p6 = por %p224_p5, %p223_p4 }
  0x11   :  { %p226_p7 = pnand %p225_p6, %p219_p3 }
  0x13   :  { %229 = shalt.err (!%p226_p7)
}
  0x14   :  { %s307_s6 = smov [#allocation9]   ;;  %s308_s7 = smov [#allocation10]  }
  0x15   :  { %32 = dma.vmem_to_smem %s30_s20, 16, %s307_s6, [#allocation8]  }
  0x16   :  { %s42_s8 = sshll.u32 %s308_s7, 4  ;;  %s309_s9 = smov [#allocation11]   ;;  %s43_s8 = int_to_ptr.vmem [resolvable:$true] %s42_s8 }
  0x17   :  { %s63_s10 = sshll.u32 %s309_s9, 4  ;;  %s230_s0 = scalar_lea.hbm %s397_s2, 128  ;;  %s64_s10 = int_to_ptr.vmem [resolvable:$true] %s63_s10 }
  0x18   :  { %p231_p8 = scmp.ne.s32.totalorder %s397_s2, %s230_s0  ;;  %p234_p9 = scmp.lt.u32.totalorder %s230_s0, %s397_s2 }
  0x1a   :  { %p236_p10 = pnand %p234_p9, %p231_p8 }
  0x1c   :  { %239 = shalt.err (!%p236_p10)
}
  0x1d   :  { %s240_s17 = scalar_lea.vmem %s43_s8, 128  ;;  %p245_p12 = scmp.lt.s32.totalorder %s43_s8, %s43_s8 }
  0x1e   :  { %p241_p11 = scmp.ne.s32.totalorder %s43_s8, %s240_s17  ;;  %p246_p13 = scmp.lt.s32.totalorder %s240_s17, %s240_s17 }
  0x20   :  { %p247_p0 = por %p246_p13, %p245_p12 }
  0x22   :  { %p248_p1 = pnand %p247_p0, %p241_p11 }
  0x24   :  { %251 = shalt.err (!%p248_p1)
}
  0x25   :  { %45 = dma.hbm_to_vmem [thread:$0]  %s397_s2, 128, %s43_s8, [#allocation5]  }
  0x26   :  { %s252_s22 = scalar_lea.hbm %s399_s4, 128 }
  0x27   :  { %p253_p2 = scmp.ne.s32.totalorder %s399_s4, %s252_s22  ;;  %p256_p3 = scmp.lt.u32.totalorder %s252_s22, %s399_s4 }
  0x29   :  { %p258_p4 = pnand %p256_p3, %p253_p2 }
  0x2b   :  { %261 = shalt.err (!%p258_p4)
}
  0x2c   :  { %s262_s27 = scalar_lea.vmem %s64_s10, 128  ;;  %p267_p6 = scmp.lt.s32.totalorder %s64_s10, %s64_s10 }
  0x2d   :  { %p263_p5 = scmp.ne.s32.totalorder %s64_s10, %s262_s27  ;;  %p268_p7 = scmp.lt.s32.totalorder %s262_s27, %s262_s27 }
  0x2f   :  { %p269_p8 = por %p268_p7, %p267_p6 }
  0x31   :  { %p270_p9 = pnand %p269_p8, %p263_p5 }
  0x33   :  { %273 = shalt.err (!%p270_p9)
}
  0x34   :  { %66 = dma.hbm_to_vmem [thread:$0]  %s399_s4, 128, %s64_s10, [#allocation12]  }
  0x35   :  { %296 = dma.done.wait [#allocation7], 16  }
  0x36   :  { %297 = vsyncadd [#allocation7], 4294967280 }
  0x37   :  { %298 = dma.done.wait [#allocation8], 16  }
  0x38   :  { %299 = vsyncadd [#allocation8], 4294967280 }
  0x39   :  { %300 = dma.done.wait [#allocation5], 128  }
  0x3a   :  { %301 = vsyncadd [#allocation5], 4294967168 }
  0x3b   :  { %302 = dma.done.wait [#allocation12], 128  }
  0x3c   :  { %303 = vsyncadd [#allocation12], 4294967168 }
  0x3d   :  { %79 = sfence }
  0x3e   :  { %s99_s29 = sld [smem:[#allocation4]]  ;;  %v102_v0 = vld [vmem:[#allocation10] sm:$0xff]  ;;  %v103_v3 = vld [vmem:[%s398_s3] sm:$0xff]  ;;  %v104_v15 = vld [vmem:[#allocation11] sm:$0xff]  ;;  %s189_s3 = sld [smem:[#allocation4 + $0x1]] }
  0x3f   :  { %v115_v1 = vand.u32 2147483647, %v102_v0  ;;  %v112_v17 = vmax.f32 %v102_v0, 0.0  ;;  %v113_v18 = vmul.f32 %v104_v15, %v102_v0  ;;  %s190_s4 = sld [smem:[#allocation4 + $0x2]]  ;;  %s310_s10 = smov [#allocation13]  }
  0x40   :  { %s171_s11 = sshll.u32 %s310_s10, 4  ;;  %s172_s11 = int_to_ptr.vmem [resolvable:$true] %s171_s11 }
  0x41   :  { %v116_v2 = vsub.f32 0.0, %v115_v1  ;;  %v114_v22 = vsub.f32 %v112_v17, %v113_v18  ;;  %s274_s0 = scalar_lea.vmem %s172_s11, 128  ;;  %p279_p11 = scmp.lt.s32.totalorder %s172_s11, %s172_s11 }
  0x42   :  { %p275_p10 = scmp.ne.s32.totalorder %s172_s11, %s274_s0  ;;  %p280_p12 = scmp.lt.s32.totalorder %s274_s0, %s274_s0 }
  0x43   :  { %v117_v4 = vmul.f32 1.442695, %v116_v2 }
  0x44   :  { %v105_v5 = vstv %s99_s29  ;;  %p281_p13 = por %p280_p12, %p279_p11 }
  0x45   :  { %v106_v6 = vmul.f32 %v105_v5, %v102_v0  ;;  %v108_v7 = vmul.f32 %v105_v5, %v103_v3  ;;  %200 = vpow2.f32 %v117_v4 }
  0x46   :  { %p282_p0 = pnand %p281_p13, %p275_p10 }
  0x47   :  { %202 = vtanh.f32 %v106_v6 }
  0x48   :  { %204 = vtanh.f32 %v108_v7 }
  0x4f   :  { %v201_v8 = vpop.eup %200 }
  0x50   :  { %v119_v9 = vadd.f32 1.0, %v201_v8  ;;  %v122_v13 = vmul.f32 -0.5, %v201_v8  ;;  %v125_v19 = vand.u32 2147483647, %v201_v8 }
  0x51   :  { %v203_v10 = vpop.eup %202 }
  0x52   :  { %v205_v11 = vpop.eup %204  ;;  %206 = vlog2.f32 %v119_v9  ;;  %v123_v16 = vadd.f32 1.0, %v122_v13  ;;  %vm126_vm0 = vcmp.lt.f32.partialorder %v125_v19, 0.0004427343 }
  0x53   :  { %v110_v12 = vsub.f32 %v203_v10, %v205_v11 }
  0x54   :  { %v124_v20 = vmul.f32 %v201_v8, %v123_v16 }
  0x55   :  { %v111_v14 = vmul.f32 %v110_v12, %v110_v12 }
  0x57   :  { %141 = vadd.xlane.f32.xlu0 %v111_v14 }
  0x5c   :  { %v207_v21 = vpop.eup %206 }
  0x5d   :  { %v121_v23 = vmul.f32 0.6931472, %v207_v21 }
  0x5f   :  { %v127_v24 = vsel %vm126_vm0, %v124_v20, %v121_v23 }
  0x60   :  { %v128_v25 = vadd.f32 %v127_v24, %v114_v22 }
  0x62   :  { %152 = vadd.xlane.f32.xlu0 %v128_v25 }
  0xe4   :  { %v142_v26 = vpop.xlane.xlu0 %141 }
  0xe5   :  { %v143_v27 = vrot.slane %v142_v26, 4 }
  0xe7   :  { %v144_v28 = vadd.f32 %v143_v27, %v142_v26 }
  0xe9   :  { %v145_v29 = vrot.slane %v144_v28, 2 }
  0xeb   :  { %v146_v30 = vadd.f32 %v145_v29, %v144_v28 }
  0xed   :  { %v147_v31 = vrot.slane %v146_v30, 1 }
  0xef   :  { %v153_v32 = vpop.xlane.xlu0 %152  ;;  %v148_v33 = vadd.f32 %v147_v31, %v146_v30 }
  0xf0   :  { %v154_v34 = vrot.slane %v153_v32, 4 }
  0xf1   :  { %191 = vpush %v148_v33 }
  0xf2   :  { %v155_v35 = vadd.f32 %v154_v34, %v153_v32 }
  0xf4   :  { %v156_v36 = vrot.slane %v155_v35, 2 }
  0xf6   :  { %v157_v37 = vadd.f32 %v156_v36, %v155_v35 }
  0xf8   :  { %v158_v38 = vrot.slane %v157_v37, 1 }
  0xfa   :  { %v159_v39 = vadd.f32 %v158_v38, %v157_v37 }
  0xfc   :  { %193 = vpush %v159_v39 }
 0x122   :  { %s192_s6 = spop %191 }
 0x123   :  { %s150_s7 = smul.f32 %s192_s6, %s189_s3 }
 0x12d   :  { %s194_s8 = spop %193 }
 0x12e   :  { %s161_s9 = smul.f32 %s194_s8, %s190_s4 }
 0x130   :  { %s162_s12 = sadd.f32 %s161_s9, %s150_s7 }
 0x132   :  { %v163_v40 = vstv %s162_s12 }
 0x133   :  { %164 = vst [vmem:[#allocation13] sm:$0xff] %v163_v40 }
 0x134   :  { %285 = shalt.err (!%p282_p0)
}
 0x135   :  { %s286_s15 = scalar_lea.hbm %s400_s5, 128 }
 0x136   :  { %p287_p1 = scmp.ne.s32.totalorder %s400_s5, %s286_s15  ;;  %p290_p2 = scmp.lt.u32.totalorder %s286_s15, %s400_s5 }
 0x138   :  { %p292_p3 = pnand %p290_p2, %p287_p1 }
 0x13a   :  { %295 = shalt.err (!%p292_p3)
}
 0x13b   :  { %174 = dma.vmem_to_hbm [thread:$0]  %s172_s11, 128, %s400_s5, [#allocation6]  }
 0x13c   :  { %304 = dma.done.wait [#allocation6], 128  }
 0x13d   :  { %305 = vsyncadd [#allocation6], 4294967168 }
 0x13e   :  { %178 = vsyncpa [#allocation5], 1 }
 0x13f   :  { %179 = vsyncpa [#allocation12], 1 }
 0x140   :  { %180 = vsyncpa [#allocation6], 1 }
 0x141   :  { %181 = vsyncpa [#allocation7], 1 }
 0x142   :  { %182 = vsyncpa [#allocation8], 1 }

</bundles_post_ra>
